<compile_context>
chip_gen: v7x
topology: tpu7x:2x2x1
jax: 0.10.0
libtpu: 0.0.40
codegen_flags: <defaults>
</compile_context>

<pallas_src>
import jax
import jax.numpy as jnp
from jax.experimental import pallas as pl
from jax.experimental.pallas import tpu as pltpu

# TODO(synk): GaussianNoise class not shown in the source snippet; assume the
# usual additive N(0, sigma^2) with sigma = 0.1, training-mode only (no eval
# path is implemented here, matching the module's training-time forward).
NOISE_SIGMA = 0.1
DROP_P = 0.2
LEAK = 0.2
LANE = 128


def d_net_kernel(x_ref, z_ref, m1_ref, m2_ref,
                 w1_ref, b1_ref, w2_ref, b2_ref, w3_ref, b3_ref,
                 out_ref):
    # GaussianNoise (noise pre-scaled by sigma in the wrapper).
    x = x_ref[...] + z_ref[...]                                   # f32 [TB, IN]

    # Layer 1: bf16 matmul, f32 accumulate, leaky_relu, fused dropout*scale.
    h = jnp.dot(x.astype(jnp.bfloat16), w1_ref[...],
                preferred_element_type=jnp.float32) + b1_ref[...]
    h = jnp.where(h > 0, h, LEAK * h) * m1_ref[...]               # mask holds {0, 1/(1-p)}

    # Layer 2.
    h = jnp.dot(h.astype(jnp.bfloat16), w2_ref[...],
                preferred_element_type=jnp.float32) + b2_ref[...]
    h = jnp.where(h > 0, h, LEAK * h) * m2_ref[...]

    # Output layer (lane-padded weights); only the first column is real.
    logits = jnp.dot(h.astype(jnp.bfloat16), w3_ref[...],
                     preferred_element_type=jnp.float32) + b3_ref[...]
    out_ref[...] = jax.nn.sigmoid(logits[:, :1])                  # [TB, 1]


def init_params(key, input_size, hidden_size):
    """PyTorch-style Linear init: U(-1/sqrt(fan_in), 1/sqrt(fan_in))."""
    ks = jax.random.split(key, 6)

    def lin(kw, kb, fan_in, fan_out):
        bound = 1.0 / jnp.sqrt(fan_in)
        w = jax.random.uniform(kw, (fan_in, fan_out), jnp.float32, -bound, bound)
        b = jax.random.uniform(kb, (fan_out,), jnp.float32, -bound, bound)
        return w, b

    w1, b1 = lin(ks[0], ks[1], input_size, hidden_size)
    w2, b2 = lin(ks[2], ks[3], hidden_size, hidden_size)
    w3, b3 = lin(ks[4], ks[5], hidden_size, 1)
    return w1, b1, w2, b2, w3, b3


def prepare_params(params, input_size):
    """One-time prep: pad hidden to a multiple of 128, lane-pad the output
    layer, and cast weights to bf16.  Zero padding is semantics-preserving."""
    w1, b1, w2, b2, w3, b3 = params
    H = w1.shape[1]
    H_pad = ((H + LANE - 1) // LANE) * LANE

    w1p = jnp.zeros((input_size, H_pad), jnp.float32).at[:, :H].set(w1)
    b1p = jnp.zeros((1, H_pad), jnp.float32).at[:, :H].set(b1.reshape(1, -1))
    w2p = jnp.zeros((H_pad, H_pad), jnp.float32).at[:H, :H].set(w2)
    b2p = jnp.zeros((1, H_pad), jnp.float32).at[:, :H].set(b2.reshape(1, -1))
    w3p = jnp.zeros((H_pad, LANE), jnp.float32).at[:H, :1].set(w3)
    b3p = jnp.zeros((1, LANE), jnp.float32).at[:, :1].set(b3.reshape(1, 1))

    return (w1p.astype(jnp.bfloat16), b1p,
            w2p.astype(jnp.bfloat16), b2p,
            w3p.astype(jnp.bfloat16), b3p,
            H_pad)


def d_net_forward(x, prepared, key):
    """x: [B, input_size] float32.  Returns [B, 1] float32 in (0, 1)."""
    w1, b1, w2, b2, w3, b3, H_pad = prepared
    B, IN = x.shape

    # Batch tile: 256 rows per grid step for large batches; small batches run
    # in a single step padded to a sublane multiple of 8.
    if B >= 256:
        TB = 256
    else:
        TB = ((B + 7) // 8) * 8
    B_pad = pl.cdiv(B, TB) * TB

    xp = jnp.zeros((B_pad, IN), jnp.float32).at[:B].set(x)

    # Host-side randomness (per-call key -> distinct noise/masks per row,
    # no need to mix program_id into a seed).
    kn, k1, k2 = jax.random.split(key, 3)
    noise = NOISE_SIGMA * jax.random.normal(kn, (B_pad, IN), jnp.float32)
    scale = 1.0 / (1.0 - DROP_P)
    m1 = (jax.random.uniform(k1, (B_pad, H_pad)) >= DROP_P).astype(jnp.float32) * scale
    m2 = (jax.random.uniform(k2, (B_pad, H_pad)) >= DROP_P).astype(jnp.float32) * scale

    tile = lambda i: (i, 0)       # batch-tiled operands
    const = lambda i: (0, 0)      # VMEM-resident weights / biases

    flops = 2 * B_pad * (IN * H_pad + H_pad * H_pad + H_pad * LANE)
    bytes_accessed = (
        (xp.size + noise.size + m1.size + m2.size) * 4      # activation streams (f32)
        + (w1.size + w2.size + w3.size) * 2                  # bf16 weights
        + (b1.size + b2.size + b3.size) * 4                  # f32 biases
        + B_pad * 4)                                         # output
    cost = pl.CostEstimate(flops=int(flops),
                           transcendentals=int(B_pad),       # sigmoid column
                           bytes_accessed=int(bytes_accessed))

    out = pl.pallas_call(
        d_net_kernel,
        out_shape=jax.ShapeDtypeStruct((B_pad, 1), jnp.float32),
        grid=(B_pad // TB,),
        in_specs=[
            pl.BlockSpec((TB, IN), tile),        # x
            pl.BlockSpec((TB, IN), tile),        # noise
            pl.BlockSpec((TB, H_pad), tile),     # dropout mask 1
            pl.BlockSpec((TB, H_pad), tile),     # dropout mask 2
            pl.BlockSpec((IN, H_pad), const),    # W1 (bf16)
            pl.BlockSpec((1, H_pad), const),     # b1
            pl.BlockSpec((H_pad, H_pad), const), # W2 (bf16)
            pl.BlockSpec((1, H_pad), const),     # b2
            pl.BlockSpec((H_pad, LANE), const),  # W3 (bf16, lane-padded)
            pl.BlockSpec((1, LANE), const),      # b3 (lane-padded)
        ],
        out_specs=pl.BlockSpec((TB, 1), tile),
        compiler_params=pltpu.CompilerParams(
            dimension_semantics=("parallel",),
            vmem_limit_bytes=64 << 20),
        cost_estimate=cost,
    )(xp, noise, m1, m2, w1, b1, w2, b2, w3, b3)

    return out[:B]


if __name__ == "__main__":
    key = jax.random.PRNGKey(0)
    k_x, k_p, k_fwd = jax.random.split(key, 3)

    batch, input_size, hidden_size = 8, 32, 128  # small stand-in for hidden=1000
    x = jax.random.normal(k_x, (batch, input_size), jnp.float32)
    params = init_params(k_p, input_size, hidden_size)
    prepared = prepare_params(params, input_size)

    y = d_net_forward(x, prepared, k_fwd)
    jax.block_until_ready(y)

    assert y.shape == (batch, 1)
    assert bool(jnp.all((y > 0.0) & (y < 1.0)))
    print("KERNEL_OK")
</pallas_src>

<mosaic_0001>
module attributes {stable_mosaic.version = 11 : i64} {
  func.func @d_net_kernel(%arg0: i32, %arg1: memref<8x32xf32, #tpu.memory_space<vmem>>, %arg2: memref<8x32xf32, #tpu.memory_space<vmem>>, %arg3: memref<8x128xf32, #tpu.memory_space<vmem>>, %arg4: memref<8x128xf32, #tpu.memory_space<vmem>>, %arg5: memref<32x128xbf16, #tpu.memory_space<vmem>>, %arg6: memref<1x128xf32, #tpu.memory_space<vmem>>, %arg7: memref<128x128xbf16, #tpu.memory_space<vmem>>, %arg8: memref<1x128xf32, #tpu.memory_space<vmem>>, %arg9: memref<128x128xbf16, #tpu.memory_space<vmem>>, %arg10: memref<1x128xf32, #tpu.memory_space<vmem>>, %arg11: memref<8x1xf32, #tpu.memory_space<vmem>>) attributes {dimension_semantics = [#tpu.dimension_semantics<parallel>], iteration_bounds = array<i64: 1>, scalar_prefetch = 0 : i64, scratch_operands = 0 : i64, tpu.core_type = #tpu.core_type<tc>, window_params = [{transform_indices = @transform_0, window_bounds = array<i64: 8, 32>}, {transform_indices = @transform_1, window_bounds = array<i64: 8, 32>}, {transform_indices = @transform_2, window_bounds = array<i64: 8, 128>}, {transform_indices = @transform_3, window_bounds = array<i64: 8, 128>}, {pipeline_mode = #tpu.pipeline_mode<synchronous>, transform_indices = @transform_4, window_bounds = array<i64: 32, 128>}, {pipeline_mode = #tpu.pipeline_mode<synchronous>, transform_indices = @transform_5, window_bounds = array<i64: 1, 128>}, {pipeline_mode = #tpu.pipeline_mode<synchronous>, transform_indices = @transform_6, window_bounds = array<i64: 128, 128>}, {pipeline_mode = #tpu.pipeline_mode<synchronous>, transform_indices = @transform_7, window_bounds = array<i64: 1, 128>}, {pipeline_mode = #tpu.pipeline_mode<synchronous>, transform_indices = @transform_8, window_bounds = array<i64: 128, 128>}, {pipeline_mode = #tpu.pipeline_mode<synchronous>, transform_indices = @transform_9, window_bounds = array<i64: 1, 128>}, {transform_indices = @transform_10, window_bounds = array<i64: 8, 1>}]} {
    %c0 = arith.constant 0 : index
    %c0_0 = arith.constant 0 : index
    %0 = vector.load %arg1[%c0, %c0_0] : memref<8x32xf32, #tpu.memory_space<vmem>>, vector<8x32xf32>
    %c0_1 = arith.constant 0 : index
    %c0_2 = arith.constant 0 : index
    %1 = vector.load %arg2[%c0_1, %c0_2] : memref<8x32xf32, #tpu.memory_space<vmem>>, vector<8x32xf32>
    %2 = arith.addf %0, %1 : vector<8x32xf32>
    %3 = arith.truncf %2 : vector<8x32xf32> to vector<8x32xbf16>
    %c0_3 = arith.constant 0 : index
    %c0_4 = arith.constant 0 : index
    %4 = vector.load %arg5[%c0_3, %c0_4] : memref<32x128xbf16, #tpu.memory_space<vmem>>, vector<32x128xbf16>
    %cst = arith.constant dense<0.000000e+00> : vector<8x128xf32>
    %5 = tpu.matmul %3, %4, %cst {dimension_numbers = #tpu.dot_dimension_numbers<[1], [0], [0], [1], [0, 0, 1, 1], [], []>} : vector<8x32xbf16>, vector<32x128xbf16>, vector<8x128xf32> -> vector<8x128xf32>
    %c0_5 = arith.constant 0 : index
    %c0_6 = arith.constant 0 : index
    %6 = vector.load %arg6[%c0_5, %c0_6] : memref<1x128xf32, #tpu.memory_space<vmem>>, vector<1x128xf32>
    %7 = vector.broadcast %6 : vector<1x128xf32> to vector<8x128xf32>
    %8 = arith.addf %5, %7 : vector<8x128xf32>
    %cst_7 = arith.constant 0.000000e+00 : f32
    %9 = vector.broadcast %cst_7 : f32 to vector<8x128xf32>
    %10 = arith.cmpf ogt, %8, %9 : vector<8x128xf32>
    %cst_8 = arith.constant 2.000000e-01 : f32
    %11 = vector.broadcast %cst_8 : f32 to vector<8x128xf32>
    %12 = arith.mulf %11, %8 : vector<8x128xf32>
    %13 = arith.select %10, %8, %12 : vector<8x128xi1>, vector<8x128xf32>
    %c0_9 = arith.constant 0 : index
    %c0_10 = arith.constant 0 : index
    %14 = vector.load %arg3[%c0_9, %c0_10] : memref<8x128xf32, #tpu.memory_space<vmem>>, vector<8x128xf32>
    %15 = arith.mulf %13, %14 : vector<8x128xf32>
    %16 = arith.truncf %15 : vector<8x128xf32> to vector<8x128xbf16>
    %c0_11 = arith.constant 0 : index
    %c0_12 = arith.constant 0 : index
    %17 = vector.load %arg7[%c0_11, %c0_12] : memref<128x128xbf16, #tpu.memory_space<vmem>>, vector<128x128xbf16>
    %cst_13 = arith.constant dense<0.000000e+00> : vector<8x128xf32>
    %18 = tpu.matmul %16, %17, %cst_13 {dimension_numbers = #tpu.dot_dimension_numbers<[1], [0], [0], [1], [0, 0, 1, 1], [], []>} : vector<8x128xbf16>, vector<128x128xbf16>, vector<8x128xf32> -> vector<8x128xf32>
    %c0_14 = arith.constant 0 : index
    %c0_15 = arith.constant 0 : index
    %19 = vector.load %arg8[%c0_14, %c0_15] : memref<1x128xf32, #tpu.memory_space<vmem>>, vector<1x128xf32>
    %20 = vector.broadcast %19 : vector<1x128xf32> to vector<8x128xf32>
    %21 = arith.addf %18, %20 : vector<8x128xf32>
    %cst_16 = arith.constant 0.000000e+00 : f32
    %22 = vector.broadcast %cst_16 : f32 to vector<8x128xf32>
    %23 = arith.cmpf ogt, %21, %22 : vector<8x128xf32>
    %cst_17 = arith.constant 2.000000e-01 : f32
    %24 = vector.broadcast %cst_17 : f32 to vector<8x128xf32>
    %25 = arith.mulf %24, %21 : vector<8x128xf32>
    %26 = arith.select %23, %21, %25 : vector<8x128xi1>, vector<8x128xf32>
    %c0_18 = arith.constant 0 : index
    %c0_19 = arith.constant 0 : index
    %27 = vector.load %arg4[%c0_18, %c0_19] : memref<8x128xf32, #tpu.memory_space<vmem>>, vector<8x128xf32>
    %28 = arith.mulf %26, %27 : vector<8x128xf32>
    %29 = arith.truncf %28 : vector<8x128xf32> to vector<8x128xbf16>
    %c0_20 = arith.constant 0 : index
    %c0_21 = arith.constant 0 : index
    %30 = vector.load %arg9[%c0_20, %c0_21] : memref<128x128xbf16, #tpu.memory_space<vmem>>, vector<128x128xbf16>
    %cst_22 = arith.constant dense<0.000000e+00> : vector<8x128xf32>
    %31 = tpu.matmul %29, %30, %cst_22 {dimension_numbers = #tpu.dot_dimension_numbers<[1], [0], [0], [1], [0, 0, 1, 1], [], []>} : vector<8x128xbf16>, vector<128x128xbf16>, vector<8x128xf32> -> vector<8x128xf32>
    %c0_23 = arith.constant 0 : index
    %c0_24 = arith.constant 0 : index
    %32 = vector.load %arg10[%c0_23, %c0_24] : memref<1x128xf32, #tpu.memory_space<vmem>>, vector<1x128xf32>
    %33 = vector.broadcast %32 : vector<1x128xf32> to vector<8x128xf32>
    %34 = arith.addf %31, %33 : vector<8x128xf32>
    %35 = vector.extract_strided_slice %34 {offsets = [0, 0], sizes = [8, 1], strides = [1, 1]} : vector<8x128xf32> to vector<8x1xf32>
    %36 = arith.negf %35 : vector<8x1xf32>
    %37 = math.exp %36 : vector<8x1xf32>
    %cst_25 = arith.constant 1.000000e+00 : f32
    %38 = vector.broadcast %cst_25 : f32 to vector<8x1xf32>
    %39 = arith.addf %38, %37 : vector<8x1xf32>
    %40 = arith.divf %38, %39 : vector<8x1xf32>
    %c0_26 = arith.constant 0 : index
    %c0_27 = arith.constant 0 : index
    %41 = vector.load %arg11[%c0_26, %c0_27] : memref<8x1xf32, #tpu.memory_space<vmem>>, vector<8x1xf32>
    tpu.vector_store %arg11[%c0_26, %c0_27], %40 {strides = array<i32>} : memref<8x1xf32, #tpu.memory_space<vmem>>, vector<8x1xf32>,
    return
  }
  func.func @transform_0(%arg0: i32) -> (i32, i32) {
    %c0_i32 = arith.constant 0 : i32
    %c0_i32_0 = arith.constant 0 : i32
    return %arg0, %c0_i32 : i32, i32
  }
  func.func @transform_1(%arg0: i32) -> (i32, i32) {
    %c0_i32 = arith.constant 0 : i32
    %c0_i32_0 = arith.constant 0 : i32
    return %arg0, %c0_i32 : i32, i32
  }
  func.func @transform_2(%arg0: i32) -> (i32, i32) {
    %c0_i32 = arith.constant 0 : i32
    %c0_i32_0 = arith.constant 0 : i32
    return %arg0, %c0_i32 : i32, i32
  }
  func.func @transform_3(%arg0: i32) -> (i32, i32) {
    %c0_i32 = arith.constant 0 : i32
    %c0_i32_0 = arith.constant 0 : i32
    return %arg0, %c0_i32 : i32, i32
  }
  func.func @transform_4(%arg0: i32) -> (i32, i32) {
    %c0_i32 = arith.constant 0 : i32
    %c0_i32_0 = arith.constant 0 : i32
    %c0_i32_1 = arith.constant 0 : i32
    return %c0_i32, %c0_i32_0 : i32, i32
  }
  func.func @transform_5(%arg0: i32) -> (i32, i32) {
    %c0_i32 = arith.constant 0 : i32
    %c0_i32_0 = arith.constant 0 : i32
    %c0_i32_1 = arith.constant 0 : i32
    return %c0_i32, %c0_i32_0 : i32, i32
  }
  func.func @transform_6(%arg0: i32) -> (i32, i32) {
    %c0_i32 = arith.constant 0 : i32
    %c0_i32_0 = arith.constant 0 : i32
    %c0_i32_1 = arith.constant 0 : i32
    return %c0_i32, %c0_i32_0 : i32, i32
  }
  func.func @transform_7(%arg0: i32) -> (i32, i32) {
    %c0_i32 = arith.constant 0 : i32
    %c0_i32_0 = arith.constant 0 : i32
    %c0_i32_1 = arith.constant 0 : i32
    return %c0_i32, %c0_i32_0 : i32, i32
  }
  func.func @transform_8(%arg0: i32) -> (i32, i32) {
    %c0_i32 = arith.constant 0 : i32
    %c0_i32_0 = arith.constant 0 : i32
    %c0_i32_1 = arith.constant 0 : i32
    return %c0_i32, %c0_i32_0 : i32, i32
  }
  func.func @transform_9(%arg0: i32) -> (i32, i32) {
    %c0_i32 = arith.constant 0 : i32
    %c0_i32_0 = arith.constant 0 : i32
    %c0_i32_1 = arith.constant 0 : i32
    return %c0_i32, %c0_i32_0 : i32, i32
  }
  func.func @transform_10(%arg0: i32) -> (i32, i32) {
    %c0_i32 = arith.constant 0 : i32
    %c0_i32_0 = arith.constant 0 : i32
    return %arg0, %c0_i32 : i32, i32
  }
}

</mosaic_0001>

<bundles_post_ra>
// kernel: tpu_custom_call.1
= control target key start
LH: loop header
LB: loop body
LE: loop exit
PB: predicated region body
PF: predicated region fallthrough
CT: control target
= control target key end

     0   :  { %15 = vsyncpa [#allocation3], 0  ;;  %s1112_s0 = inlined_call_operand.hbm [shape: f32[8,32], index: 0, kind: input, shape index: {}]   ;;  %s1113_s1 = inlined_call_operand.hbm [shape: f32[8,32], index: 1, kind: input, shape index: {}]   ;;  %s1114_s2 = inlined_call_operand.hbm [shape: f32[8,128], index: 2, kind: input, shape index: {}]   ;;  %s1115_s3 = inlined_call_operand.hbm [shape: f32[8,128], index: 3, kind: input, shape index: {}]   ;;  %s1116_s4 = inlined_call_operand.hbm [shape: bf16[32,128], index: 4, kind: input, shape index: {}]   ;;  %s1117_s5 = inlined_call_operand.hbm [shape: f32[1,128], index: 5, kind: input, shape index: {}]   ;;  %s1118_s6 = inlined_call_operand.hbm [shape: bf16[128,128], index: 6, kind: input, shape index: {}]   ;;  %s1119_s7 = inlined_call_operand.hbm [shape: f32[1,128], index: 7, kind: input, shape index: {}]   ;;  %s1120_s8 = inlined_call_operand.hbm [shape: bf16[128,128], index: 8, kind: input, shape index: {}]   ;;  %s1121_s9 = inlined_call_operand.hbm [shape: f32[1,128], index: 9, kind: input, shape index: {}]   ;;  %s1122_s10 = inlined_call_operand.hbm [shape: f32[8,1], index: 10, kind: output, shape index: {}]  }
   0x1   :  { %16 = vsyncpa [#allocation6], 0 }
   0x2   :  { %17 = vsyncpa [#allocation9], 0 }
   0x3   :  { %18 = vsyncpa [#allocation12], 0 }
   0x4   :  { %19 = vsyncpa [#allocation15], 0 }
   0x5   :  { %20 = vsyncpa [#allocation18], 0 }
   0x6   :  { %21 = vsyncpa [#allocation4], 0  ;;  %s877_s13 = smov [#allocation5]   ;;  %s878_s15 = smov [#allocation8]  }
   0x7   :  { %s38_s14 = sshll.u32 %s877_s13, 4  ;;  %s58_s16 = sshll.u32 %s878_s15, 4  ;;  %s39_s14 = int_to_ptr.vmem [resolvable:$true] %s38_s14  ;;  %s59_s16 = int_to_ptr.vmem [resolvable:$true] %s58_s16 }
   0x8   :  { %s621_s19 = scalar_lea.hbm %s1113_s1, 128 }
   0x9   :  { %p622_p0 = scmp.ne.s32.totalorder %s1113_s1, %s621_s19  ;;  %p625_p1 = scmp.lt.u32.totalorder %s621_s19, %s1113_s1 }
   0xb   :  { %p627_p2 = pnand %p625_p1, %p622_p0 }
   0xd   :  { %630 = shalt.err (!%p627_p2)
}
   0xe   :  { %s631_s24 = scalar_lea.vmem %s39_s14, 128  ;;  %p636_p4 = scmp.lt.s32.totalorder %s39_s14, %s39_s14 }
   0xf   :  { %p632_p3 = scmp.ne.s32.totalorder %s39_s14, %s631_s24  ;;  %p637_p5 = scmp.lt.s32.totalorder %s631_s24, %s631_s24 }
  0x11   :  { %p638_p6 = por %p637_p5, %p636_p4 }
  0x13   :  { %p639_p7 = pnand %p638_p6, %p632_p3 }
  0x15   :  { %642 = shalt.err (!%p639_p7)
}
  0x16   :  { %41 = dma.hbm_to_vmem [thread:$0]  %s1113_s1, 128, %s39_s14, [#allocation6]  }
  0x17   :  { %s643_s29 = scalar_lea.hbm %s1115_s3, 128 }
  0x18   :  { %p644_p8 = scmp.ne.s32.totalorder %s1115_s3, %s643_s29  ;;  %p647_p9 = scmp.lt.u32.totalorder %s643_s29, %s1115_s3 }
  0x1a   :  { %p649_p10 = pnand %p647_p9, %p644_p8 }
  0x1c   :  { %652 = shalt.err (!%p649_p10)
}
  0x1d   :  { %s653_s15 = scalar_lea.vmem %s59_s16, 128  ;;  %p658_p12 = scmp.lt.s32.totalorder %s59_s16, %s59_s16 }
  0x1e   :  { %p654_p11 = scmp.ne.s32.totalorder %s59_s16, %s653_s15  ;;  %p659_p13 = scmp.lt.s32.totalorder %s653_s15, %s653_s15 }
  0x20   :  { %p660_p0 = por %p659_p13, %p658_p12 }
  0x22   :  { %p661_p1 = pnand %p660_p0, %p654_p11 }
  0x24   :  { %664 = shalt.err (!%p661_p1)
}
  0x25   :  { %61 = dma.hbm_to_vmem [thread:$0]  %s1115_s3, 128, %s59_s16, [#allocation9]  }
  0x26   :  { %s879_s17 = smov [#allocation11]   ;;  %s880_s19 = smov [#allocation14]  }
  0x27   :  { %s80_s18 = sshll.u32 %s879_s17, 4  ;;  %s102_s20 = sshll.u32 %s880_s19, 4  ;;  %s81_s18 = int_to_ptr.vmem [resolvable:$true] %s80_s18  ;;  %s103_s20 = int_to_ptr.vmem [resolvable:$true] %s102_s20 }
  0x28   :  { %s665_s23 = scalar_lea.hbm %s1117_s5, 16 }
  0x29   :  { %p666_p2 = scmp.ne.s32.totalorder %s1117_s5, %s665_s23  ;;  %p669_p3 = scmp.lt.u32.totalorder %s665_s23, %s1117_s5 }
  0x2b   :  { %p671_p4 = pnand %p669_p3, %p666_p2 }
  0x2d   :  { %674 = shalt.err (!%p671_p4)
}
  0x2e   :  { %s675_s3 = scalar_lea.vmem %s81_s18, 16  ;;  %s679_s16 = scalar_lea.vmem %s81_s18, 32 }
  0x2f   :  { %p676_p5 = scmp.ne.s32.totalorder %s81_s18, %s675_s3  ;;  %p680_p6 = scmp.lt.s32.totalorder %s81_s18, %s81_s18 }
  0x30   :  { %p681_p7 = scmp.lt.s32.totalorder %s679_s16, %s675_s3 }
  0x32   :  { %p682_p8 = por %p681_p7, %p680_p6 }
  0x34   :  { %p683_p9 = pnand %p682_p8, %p676_p5 }
  0x36   :  { %686 = shalt.err (!%p683_p9)
}
  0x37   :  { %83 = dma.hbm_to_vmem [thread:$0]  %s1117_s5, 16, %s81_s18, [#allocation12]  }
  0x38   :  { %s687_s12 = scalar_lea.hbm %s1119_s7, 16 }
  0x39   :  { %p688_p10 = scmp.ne.s32.totalorder %s1119_s7, %s687_s12  ;;  %p691_p11 = scmp.lt.u32.totalorder %s687_s12, %s1119_s7 }
  0x3b   :  { %p693_p12 = pnand %p691_p11, %p688_p10 }
  0x3d   :  { %696 = shalt.err (!%p693_p12)
}
  0x3e   :  { %s697_s17 = scalar_lea.vmem %s103_s20, 16  ;;  %s701_s19 = scalar_lea.vmem %s103_s20, 32 }
  0x3f   :  { %p698_p13 = scmp.ne.s32.totalorder %s103_s20, %s697_s17  ;;  %p702_p0 = scmp.lt.s32.totalorder %s103_s20, %s103_s20 }
  0x40   :  { %p703_p1 = scmp.lt.s32.totalorder %s701_s19, %s697_s17 }
  0x42   :  { %p704_p2 = por %p703_p1, %p702_p0 }
  0x44   :  { %p705_p3 = pnand %p704_p2, %p698_p13 }
  0x46   :  { %708 = shalt.err (!%p705_p3)
}
  0x47   :  { %105 = dma.hbm_to_vmem [thread:$0]  %s1119_s7, 16, %s103_s20, [#allocation15]  }
  0x48   :  { %s881_s21 = smov [#allocation2]   ;;  %s882_s23 = smov [#allocation7]  }
  0x49   :  { %s28_s22 = sshll.u32 %s881_s21, 4  ;;  %s48_s24 = sshll.u32 %s882_s23, 4  ;;  %s29_s22 = int_to_ptr.vmem [resolvable:$true] %s28_s22  ;;  %s49_s24 = int_to_ptr.vmem [resolvable:$true] %s48_s24 }
  0x4a   :  { %s709_s27 = scalar_lea.hbm %s1112_s0, 128 }
  0x4b   :  { %p710_p4 = scmp.ne.s32.totalorder %s1112_s0, %s709_s27  ;;  %p713_p5 = scmp.lt.u32.totalorder %s709_s27, %s1112_s0 }
  0x4d   :  { %p715_p6 = pnand %p713_p5, %p710_p4 }
  0x4f   :  { %718 = shalt.err (!%p715_p6)
}
  0x50   :  { %s719_s7 = scalar_lea.vmem %s29_s22, 128  ;;  %p724_p8 = scmp.lt.s32.totalorder %s29_s22, %s29_s22 }
  0x51   :  { %p720_p7 = scmp.ne.s32.totalorder %s29_s22, %s719_s7  ;;  %p725_p9 = scmp.lt.s32.totalorder %s719_s7, %s719_s7 }
  0x53   :  { %p726_p10 = por %p725_p9, %p724_p8 }
  0x55   :  { %p727_p11 = pnand %p726_p10, %p720_p7 }
  0x57   :  { %730 = shalt.err (!%p727_p11)
}
  0x58   :  { %31 = dma.hbm_to_vmem [thread:$0]  %s1112_s0, 128, %s29_s22, [#allocation3]  }
  0x59   :  { %s731_s13 = scalar_lea.hbm %s1114_s2, 128 }
  0x5a   :  { %p732_p12 = scmp.ne.s32.totalorder %s1114_s2, %s731_s13  ;;  %p735_p13 = scmp.lt.u32.totalorder %s731_s13, %s1114_s2 }
  0x5c   :  { %p737_p0 = pnand %p735_p13, %p732_p12 }
  0x5e   :  { %740 = shalt.err (!%p737_p0)
}
  0x5f   :  { %s741_s19 = scalar_lea.vmem %s49_s24, 128  ;;  %p746_p2 = scmp.lt.s32.totalorder %s49_s24, %s49_s24 }
  0x60   :  { %p742_p1 = scmp.ne.s32.totalorder %s49_s24, %s741_s19  ;;  %p747_p3 = scmp.lt.s32.totalorder %s741_s19, %s741_s19 }
  0x62   :  { %p748_p4 = por %p747_p3, %p746_p2 }
  0x64   :  { %p749_p5 = pnand %p748_p4, %p742_p1 }
  0x66   :  { %752 = shalt.err (!%p749_p5)
}
  0x67   :  { %51 = dma.hbm_to_vmem [thread:$0]  %s1114_s2, 128, %s49_s24, [#allocation6]  }
  0x68   :  { %s883_s18 = smov [#allocation10]   ;;  %s753_s25 = scalar_lea.hbm %s1116_s4, 256 }
  0x69   :  { %s67_s21 = sshll.u32 %s883_s18, 4  ;;  %p754_p6 = scmp.ne.s32.totalorder %s1116_s4, %s753_s25  ;;  %s68_s21 = int_to_ptr.vmem [resolvable:$true] %s67_s21 }
  0x6a   :  { %p757_p7 = scmp.lt.u32.totalorder %s753_s25, %s1116_s4 }
  0x6c   :  { %p759_p8 = pnand %p757_p7, %p754_p6 }
  0x6e   :  { %762 = shalt.err (!%p759_p8)
}
  0x6f   :  { %s763_s28 = scalar_lea.vmem %s68_s21, 256  ;;  %p768_p10 = scmp.lt.s32.totalorder %s68_s21, %s68_s21 }
  0x70   :  { %p764_p9 = scmp.ne.s32.totalorder %s68_s21, %s763_s28  ;;  %p769_p11 = scmp.lt.s32.totalorder %s763_s28, %s763_s28 }
  0x72   :  { %p770_p12 = por %p769_p11, %p768_p10 }
  0x74   :  { %p771_p13 = pnand %p770_p12, %p764_p9 }
  0x76   :  { %774 = shalt.err (!%p771_p13)
}
  0x77   :  { %s884_s2 = smov 64   ;;  %s885_s24 = smov 4  }
  0x78   :  { %73 = dma.hbm_to_vmem [thread:$0]  %s1116_s4, 256, %s68_s21, [#allocation9], %s884_s2, %s884_s2, %s885_s24  }
  0x79   :  { %s886_s20 = smov [#allocation13]   ;;  %s887_s11 = smov [#allocation16]  }
  0x7a   :  { %s89_s30 = sshll.u32 %s886_s20, 4  ;;  %s111_s12 = sshll.u32 %s887_s11, 4  ;;  %s90_s30 = int_to_ptr.vmem [resolvable:$true] %s89_s30  ;;  %s112_s12 = int_to_ptr.vmem [resolvable:$true] %s111_s12 }
  0x7b   :  { %s775_s1 = scalar_lea.hbm %s1118_s6, 1024 }
  0x7c   :  { %p776_p0 = scmp.ne.s32.totalorder %s1118_s6, %s775_s1  ;;  %p779_p1 = scmp.lt.u32.totalorder %s775_s1, %s1118_s6 }
  0x7e   :  { %p781_p2 = pnand %p779_p1, %p776_p0 }
  0x80   :  { %784 = shalt.err (!%p781_p2)
}
  0x81   :  { %s785_s4 = scalar_lea.vmem %s90_s30, 1024  ;;  %p790_p4 = scmp.lt.s32.totalorder %s90_s30, %s90_s30 }
  0x82   :  { %p786_p3 = scmp.ne.s32.totalorder %s90_s30, %s785_s4  ;;  %p791_p5 = scmp.lt.s32.totalorder %s785_s4, %s785_s4 }
  0x84   :  { %p792_p6 = por %p791_p5, %p790_p4 }
  0x86   :  { %p793_p7 = pnand %p792_p6, %p786_p3 }
  0x88   :  { %796 = shalt.err (!%p793_p7)
}
  0x89   :  { %95 = dma.hbm_to_vmem [thread:$0]  %s1118_s6, 1024, %s90_s30, [#allocation12], %s884_s2, %s884_s2, %s885_s24  }
  0x8a   :  { %s797_s23 = scalar_lea.hbm %s1120_s8, 1024 }
  0x8b   :  { %p798_p8 = scmp.ne.s32.totalorder %s1120_s8, %s797_s23  ;;  %p801_p9 = scmp.lt.u32.totalorder %s797_s23, %s1120_s8 }
  0x8d   :  { %p803_p10 = pnand %p801_p9, %p798_p8 }
  0x8f   :  { %806 = shalt.err (!%p803_p10)
}
  0x90   :  { %s807_s16 = scalar_lea.vmem %s112_s12, 1024  ;;  %p812_p12 = scmp.lt.s32.totalorder %s112_s12, %s112_s12 }
  0x91   :  { %p808_p11 = scmp.ne.s32.totalorder %s112_s12, %s807_s16  ;;  %p813_p13 = scmp.lt.s32.totalorder %s807_s16, %s807_s16 }
  0x93   :  { %p814_p0 = por %p813_p13, %p812_p12 }
  0x95   :  { %p815_p1 = pnand %p814_p0, %p808_p11 }
  0x97   :  { %818 = shalt.err (!%p815_p1)
}
  0x98   :  { %117 = dma.hbm_to_vmem [thread:$0]  %s1120_s8, 1024, %s112_s12, [#allocation15], %s884_s2, %s884_s2, %s885_s24  }
  0x99   :  { %s888_s29 = smov [#allocation17]   ;;  %s819_s11 = scalar_lea.hbm %s1121_s9, 16 }
  0x9a   :  { %s124_s7 = sshll.u32 %s888_s29, 4  ;;  %p820_p2 = scmp.ne.s32.totalorder %s1121_s9, %s819_s11  ;;  %s125_s7 = int_to_ptr.vmem [resolvable:$true] %s124_s7 }
  0x9b   :  { %p823_p3 = scmp.lt.u32.totalorder %s819_s11, %s1121_s9 }
  0x9d   :  { %p825_p4 = pnand %p823_p3, %p820_p2 }
  0x9f   :  { %828 = shalt.err (!%p825_p4)
}
  0xa0   :  { %s829_s17 = scalar_lea.vmem %s125_s7, 16  ;;  %s833_s8 = scalar_lea.vmem %s125_s7, 32 }
  0xa1   :  { %p830_p5 = scmp.ne.s32.totalorder %s125_s7, %s829_s17  ;;  %p834_p6 = scmp.lt.s32.totalorder %s125_s7, %s125_s7 }
  0xa2   :  { %p835_p7 = scmp.lt.s32.totalorder %s833_s8, %s829_s17 }
  0xa4   :  { %p836_p8 = por %p835_p7, %p834_p6 }
  0xa6   :  { %p837_p9 = pnand %p836_p8, %p830_p5 }
  0xa8   :  { %840 = shalt.err (!%p837_p9)
}
  0xa9   :  { %127 = dma.hbm_to_vmem [thread:$0]  %s1121_s9, 16, %s125_s7, [#allocation18]  }
  0xaa   :  { %863 = dma.done.wait [#allocation3], 128  }
  0xab   :  { %864 = vsyncadd [#allocation3], 4294967168 }
  0xac   :  { %865 = dma.done.wait [#allocation6], 256  }
  0xad   :  { %866 = vsyncadd [#allocation6], 4294967040 }
  0xae   :  { %867 = dma.done.wait [#allocation9], 384  }
  0xaf   :  { %868 = vsyncadd [#allocation9], 4294966912 }
  0xb0   :  { %869 = dma.done.wait [#allocation12], 1040  }
  0xb1   :  { %870 = vsyncadd [#allocation12], 4294966256 }
  0xb2   :  { %871 = dma.done.wait [#allocation15], 1040  }
  0xb3   :  { %872 = vsyncadd [#allocation15], 4294966256 }
  0xb4   :  { %873 = dma.done.wait [#allocation18], 16  }
  0xb5   :  { %874 = vsyncadd [#allocation18], 4294967280  ;;  %v889_v0 = vmov 0.0   ;;  %vm890_vm0 = vmmov 0   ;;  %v599_v1 = vld [vmem:[#allocation10] sm:$0xff]   ;;  %v600_v2 = vld [vmem:[#allocation10 + $0x8] sm:$0xff]  }
  0xb6   :  { %536 = vmatprep.subr.bf16.mxu0 %v889_v0  ;;  %540 = vmatprep.mubr.msk.bf16.mxu0 %vm890_vm0, %v889_v0  ;;  %v159_v3 = vld [vmem:[#allocation2] sm:$0xff]  ;;  %v160_v4 = vld [vmem:[#allocation5] sm:$0xff]  ;;  %v601_v6 = vld [vmem:[#allocation13] sm:$0xff]   ;;  %vm186_vm1 = vcmask 261120   ;;  %s891_s9 = smov [#allocation19]   ;;  %vm470_vm4 = vcmask 7168  }
  0xb7   :  { %544 = vmatprep.subr.bf16.mxu1 %v889_v0  ;;  %560 = vmatprep.mubr.msk.bf16.mxu1 %vm890_vm0, %v889_v0  ;;  %v161_v5 = vadd.f32 %v160_v4, %v159_v3  ;;  %v602_v8 = vld [vmem:[#allocation13 + $0x8] sm:$0xff]   ;;  %v603_v9 = vld [vmem:[#allocation13 + $0x10] sm:$0xff]   ;;  %v604_v10 = vld [vmem:[#allocation13 + $0x18] sm:$0xff]   ;;  %s478_s12 = sshll.u32 %s891_s9, 4  ;;  %s479_s12 = int_to_ptr.vmem [resolvable:$true] %s478_s12 }
  0xb8   :  { %537 = vmatpush3.bf16.msra.mxu0 %v599_v1  ;;  %545 = vmatpush3.bf16.msra.mxu1 %v601_v6  ;;  %v605_v11 = vld [vmem:[#allocation13 + $0x20] sm:$0xff]   ;;  %v606_v12 = vld [vmem:[#allocation13 + $0x28] sm:$0xff]   ;;  %v607_v13 = vld [vmem:[#allocation13 + $0x30] sm:$0xff]   ;;  %s841_s19 = scalar_lea.vmem %s479_s12, 128  ;;  %p846_p11 = scmp.lt.s32.totalorder %s479_s12, %s479_s12 }
  0xb9   :  { %538 = vmatprep.subr.bf16.mxu0 %v889_v0  ;;  %v162_v7 = vpack.c.bf16 %v161_v5, %v161_v5  ;;  %546 = vmatprep.subr.bf16.mxu1 %v889_v0  ;;  %v608_v14 = vld [vmem:[#allocation13 + $0x38] sm:$0xff]   ;;  %v609_v15 = vld [vmem:[#allocation16] sm:$0xff]   ;;  %v610_v16 = vld [vmem:[#allocation16 + $0x8] sm:$0xff]   ;;  %p842_p10 = scmp.ne.s32.totalorder %s479_s12, %s841_s19  ;;  %p847_p12 = scmp.lt.s32.totalorder %s841_s19, %s841_s19 }
  0xba   :  { %v611_v17 = vld [vmem:[#allocation16 + $0x10] sm:$0xff]   ;;  %v612_v18 = vld [vmem:[#allocation16 + $0x18] sm:$0xff]   ;;  %v613_v19 = vld [vmem:[#allocation16 + $0x20] sm:$0xff]  }
  0xbb   :  { %v614_v20 = vld [vmem:[#allocation16 + $0x28] sm:$0xff]   ;;  %v492_v21 = vld [vmem:[#allocation11] ss:$0 sm:$0xff]  ;;  %v615_v32 = vld [vmem:[#allocation16 + $0x30] sm:$0xff]   ;;  %p848_p13 = por %p847_p12, %p846_p11 }
  0xbc   :  { %539 = vmatpush3.bf16.msra.mxu0 %v600_v2  ;;  %547 = vmatpush3.bf16.msra.mxu1 %v602_v8  ;;  %v233_v28 = vld [vmem:[#allocation7] sm:$0xff]  ;;  %v350_v40 = vld [vmem:[#allocation8] sm:$0xff] }
  0xbd   :  { %564 = vmatprep.subr.bf16.mxu0 %v889_v0  ;;  %548 = vmatprep.subr.bf16.mxu1 %v889_v0  ;;  %v616_v33 = vld [vmem:[#allocation16 + $0x38] sm:$0xff]   ;;  %v505_v45 = vld [vmem:[#allocation17] ss:$0 sm:$0xff]  ;;  %p849_p0 = pnand %p848_p13, %p842_p10 }
  0xbe   :  { %v496_v34 = vld [vmem:[#allocation14] ss:$0 sm:$0xff] }
  0xbf   :  { %541 = vmatmul.mubr.msk.bf16.vlgmr.msra.gmra.mrb[0].mxu0 %vm186_vm1, %v162_v7 }
  0xc0   :  { %580 = vmatprep.mubr.msk.bf16.mxu0 %vm890_vm0, %v889_v0  ;;  %549 = vmatpush3.bf16.msra.mxu1 %v603_v9 }
  0xc1   :  { %550 = vmatprep.subr.bf16.mxu1 %v889_v0  ;;  %565 = vmatpush3.bf16.msra.mxu0 %v609_v15 }
  0xc2   :  { %566 = vmatprep.subr.bf16.mxu0 %v889_v0 }
  0xc4   :  { %551 = vmatpush3.bf16.msra.mxu1 %v604_v10 }
  0xc5   :  { %552 = vmatprep.subr.bf16.mxu1 %v889_v0  ;;  %567 = vmatpush3.bf16.msra.mxu0 %v610_v16 }
  0xc6   :  { %568 = vmatprep.subr.bf16.mxu0 %v889_v0 }
  0xc8   :  { %553 = vmatpush3.bf16.msra.mxu1 %v605_v11 }
  0xc9   :  { %554 = vmatprep.subr.bf16.mxu1 %v889_v0  ;;  %569 = vmatpush3.bf16.msra.mxu0 %v611_v17 }
  0xca   :  { %570 = vmatprep.subr.bf16.mxu0 %v889_v0 }
  0xcc   :  { %555 = vmatpush3.bf16.msra.mxu1 %v606_v12 }
  0xcd   :  { %556 = vmatprep.subr.bf16.mxu1 %v889_v0  ;;  %571 = vmatpush3.bf16.msra.mxu0 %v612_v18 }
  0xce   :  { %572 = vmatprep.subr.bf16.mxu0 %v889_v0 }
  0xd0   :  { %557 = vmatpush3.bf16.msra.mxu1 %v607_v13 }
  0xd1   :  { %558 = vmatprep.subr.bf16.mxu1 %v889_v0  ;;  %573 = vmatpush3.bf16.msra.mxu0 %v613_v19 }
  0xd2   :  { %574 = vmatprep.subr.bf16.mxu0 %v889_v0 }
  0xd4   :  { %559 = vmatpush3.bf16.msra.mxu1 %v608_v14 }
  0xd5   :  { %575 = vmatpush3.bf16.msra.mxu0 %v614_v20 }
  0xd6   :  { %576 = vmatprep.subr.bf16.mxu0 %v889_v0 }
  0xd9   :  { %577 = vmatpush3.bf16.msra.mxu0 %v615_v32 }
  0xda   :  { %578 = vmatprep.subr.bf16.mxu0 %v889_v0 }
  0xdd   :  { %579 = vmatpush3.bf16.msra.mxu0 %v616_v33 }
 0x192   :  { %v224_v22 = vpop.f32.mrb[0].mxu0 }
 0x193   :  { %v225_v23 = vadd.f32 %v492_v21, %v224_v22  ;;  %v542_v24 = vpop.f32.mrb[1].mxu0 }
 0x194   :  { %v227_v25 = vpop.f32.mrb[2].mxu0 }
 0x195   :  { %vm230_vm2 = vcmp.gt.f32.partialorder %v225_v23, 0.0  ;;  %v231_v26 = vmul.f32 0.2, %v225_v23  ;;  %v543_v27 = vpop.f32.mrb[3].mxu0 }
 0x197   :  { %v232_v29 = vsel %vm230_vm2, %v225_v23, %v231_v26 }
 0x198   :  { %v234_v30 = vmul.f32 %v233_v28, %v232_v29 }
 0x19a   :  { %v235_v31 = vpack.c.bf16 %v234_v30, %v234_v30 }
 0x19c   :  { %561 = vmatmul.mubr.bf16.vlgmr.msra.gmra.mrb[0].mxu1 %v235_v31 }
 0x26f   :  { %v341_v35 = vpop.f32.mrb[0].mxu1 }
 0x270   :  { %v342_v36 = vadd.f32 %v496_v34, %v341_v35  ;;  %v562_v37 = vpop.f32.mrb[1].mxu1 }
 0x271   :  { %v344_v38 = vpop.f32.mrb[2].mxu1 }
 0x272   :  { %vm347_vm3 = vcmp.gt.f32.partialorder %v342_v36, 0.0  ;;  %v348_v39 = vmul.f32 0.2, %v342_v36  ;;  %v563_v41 = vpop.f32.mrb[3].mxu1 }
 0x274   :  { %v349_v42 = vsel %vm347_vm3, %v342_v36, %v348_v39 }
 0x275   :  { %v351_v43 = vmul.f32 %v350_v40, %v349_v42 }
 0x277   :  { %v352_v44 = vpack.c.bf16 %v351_v43, %v351_v43 }
 0x279   :  { %581 = vmatmul.mubr.bf16.vlgmr.msra.gmra.mrb[4].mxu0 %v352_v44 }
 0x34c   :  { %v458_v46 = vpop.f32.mrb[4].mxu0 }
 0x34d   :  { %v459_v47 = vadd.f32 %v505_v45, %v458_v46  ;;  %v582_v48 = vpop.f32.mrb[5].mxu0 }
 0x34e   :  { %v461_v49 = vpop.f32.mrb[6].mxu0 }
 0x34f   :  { %v514_v50 = vmul.f32 -1.442695, %v459_v47  ;;  %v583_v51 = vpop.f32.mrb[7].mxu0 }
 0x351   :  { %617 = vpow2.f32 %v514_v50 }
 0x35b   :  { %v618_v52 = vpop.eup %617 }
 0x35c   :  { %v467_v53 = vadd.f32 1.0, %v618_v52 }
 0x35e   :  { %619 = vrcp.f32 %v467_v53 }
 0x368   :  { %v620_v54 = vpop.eup %619 }
 0x369   :  { %471 = vst.msk [vmem:[#allocation19] sm:$0xff] %vm470_vm4, %v620_v54 }
 0x36a   :  { %852 = shalt.err (!%p849_p0)
}
 0x36b   :  { %s853_s5 = scalar_lea.hbm %s1122_s10, 128 }
 0x36c   :  { %p854_p1 = scmp.ne.s32.totalorder %s1122_s10, %s853_s5  ;;  %p857_p2 = scmp.lt.u32.totalorder %s853_s5, %s1122_s10 }
 0x36e   :  { %p859_p3 = pnand %p857_p2, %p854_p1 }
 0x370   :  { %862 = shalt.err (!%p859_p3)
}
 0x371   :  { %481 = dma.vmem_to_hbm [thread:$0]  %s479_s12, 128, %s1122_s10, [#allocation4]  }
 0x372   :  { %875 = dma.done.wait [#allocation4], 128  }
 0x373   :  { %876 = vsyncadd [#allocation4], 4294967168 }
 0x374   :  { %485 = vsyncpa [#allocation3], 1 }
 0x375   :  { %486 = vsyncpa [#allocation6], 1 }
 0x376   :  { %487 = vsyncpa [#allocation9], 1 }
 0x377   :  { %488 = vsyncpa [#allocation12], 1 }
 0x378   :  { %489 = vsyncpa [#allocation15], 1 }
 0x379   :  { %490 = vsyncpa [#allocation18], 1 }
 0x37a   :  { %491 = vsyncpa [#allocation4], 1 }

</bundles_post_ra>
